<compile_context>
chip_gen: v5e
topology: v5e:2x2
jax: 0.10.0
libtpu: 0.0.40
codegen_flags: <defaults>
</compile_context>

<pallas_src>
import math
import functools

import jax
import jax.numpy as jnp
from jax.experimental import pallas as pl
from jax.experimental.pallas import tpu as pltpu

# ----------------------------- hyperparams ---------------------------------
N_HEADS = 4
VALUE_DIM = None          # None -> value_dim = head_dim (matches module logic)
DROPOUT = 0.1             # eval mode -> identity
CONTEXT_SIZE = 64         # MAX_CONTEXT

# Flip to jnp.bfloat16 on v6e/v7x for higher MXU throughput (accumulation stays
# f32 via preferred_element_type); requires loosening the tolerance to ~2e-2.
MATMUL_DTYPE = jnp.float32


# ----------------------------- kernel ---------------------------------------
def _fused_mha_kernel(x_ref, wqkv_ref, bqkv_ref, wo_ref, bo_ref, mask_ref,
                      o_ref, cat_ref, *, n_heads, head_dim, value_dim, b_blk, seq):
    """One grid step = B_blk batch elements: fused QKV projection, per-head causal
    softmax attention (batched over B_blk), single fused output projection."""
    d_model = x_ref.shape[-1]
    m = b_blk * seq
    hh = n_heads * head_dim
    hv_w = n_heads * value_dim

    # (B_blk, T, D) -> (M, D): fill the MXU M dimension with B_blk*T rows.
    x = x_ref[...].reshape(m, d_model)

    # One wide fused QKV matmul (lane width 2*H*Hd + H*V) + bias, f32 accumulate.
    qkv = jnp.dot(x, wqkv_ref[...], preferred_element_type=jnp.float32) + bqkv_ref[...]
    qkv = qkv.reshape(b_blk, seq, hh + hh + hv_w).astype(MATMUL_DTYPE)

    mask = mask_ref[...]                                   # (1, T, T) additive 0 / -1e30

    # Static unroll over heads (H small); attention is batched over B_blk per head.
    for h in range(n_heads):
        qh = qkv[:, :, h * head_dim:(h + 1) * head_dim]                       # (B_blk,T,Hd) (pre-scaled)
        kh = qkv[:, :, hh + h * head_dim: hh + (h + 1) * head_dim]            # (B_blk,T,Hd)
        vh = qkv[:, :, 2 * hh + h * value_dim: 2 * hh + (h + 1) * value_dim]  # (B_blk,T,V)

        s = jnp.einsum('bqd,bkd->bqk', qh, kh,
                       preferred_element_type=jnp.float32)                    # (B_blk,T,T)
        s = s + mask                                                          # causal mask (additive)

        # numerically-stable softmax over last axis (kept f32: v5e VPU/EUP have no bf16)
        row_max = jnp.max(s, axis=-1, keepdims=True)
        p = jnp.exp(s - row_max)
        denom = jnp.sum(p, axis=-1, keepdims=True)
        attn = p * pl.reciprocal(denom, approx=True)       # EUP slot, essentially free

        # TODO(synk): attention dropout omitted (eval-mode identity).
        hv = jnp.einsum('bqk,bkv->bqv', attn.astype(MATMUL_DTYPE), vh,
                        preferred_element_type=jnp.float32)                   # (B_blk,T,V)
        cat_ref[:, h * value_dim:(h + 1) * value_dim] = (
            hv.reshape(m, value_dim).astype(cat_ref.dtype))

    # Single fused output projection: (M, H*V) x (H*V, D).
    out = jnp.dot(cat_ref[...], wo_ref[...],
                  preferred_element_type=jnp.float32) + bo_ref[...]           # (M, D)
    # TODO(synk): output dropout omitted (eval-mode identity).
    o_ref[...] = out.reshape(b_blk, seq, d_model).astype(o_ref.dtype)


# ----------------------------- wrapper ---------------------------------------
def _pick_b_blk(batch, seq):
    """Largest batch block whose flattened row count (B_blk*T) stays near the MXU's
    128-row sweet spot; keep >=2 grid steps (v7x has 2 TCs) only when that still
    leaves a reasonably full M dimension."""
    divs = [d for d in range(1, batch + 1) if batch % d == 0]
    fill = [d for d in divs if d * seq <= 128] or [1]
    b_blk = max(fill)
    two_step = [d for d in fill if batch // d >= 2 and d * seq >= 64]
    if batch // b_blk < 2 and two_step:
        b_blk = max(two_step)
    return b_blk


def multi_attention(x, params):
    """x: (B, T, D) float32.  params: dict of per-head weights + out proj."""
    B, T, D = x.shape
    assert T <= CONTEXT_SIZE
    H = N_HEADS
    head_dim = D // H
    value_dim = VALUE_DIM if VALUE_DIM else head_dim
    scale = math.pow(head_dim, -0.5)

    # Stack per-head weights into one wide [wq|wk|wv] slab (head-major columns),
    # fold 1/sqrt(head_dim) into Q, and cast ONCE to MATMUL_DTYPE in the wrapper.
    wq = jnp.transpose(params["wq"] * scale, (1, 0, 2)).reshape(D, H * head_dim)
    wk = jnp.transpose(params["wk"], (1, 0, 2)).reshape(D, H * head_dim)
    wv = jnp.transpose(params["wv"], (1, 0, 2)).reshape(D, H * value_dim)
    wqkv = jnp.concatenate([wq, wk, wv], axis=1).astype(MATMUL_DTYPE)   # (D, 2*H*Hd + H*V)
    bqkv = jnp.concatenate(
        [(params["bq"] * scale).reshape(1, H * head_dim),
         params["bk"].reshape(1, H * head_dim),
         params["bv"].reshape(1, H * value_dim)], axis=1).astype(jnp.float32)
    wo = params["wo"].astype(MATMUL_DTYPE)                               # (H*V, D)
    bo = params["bo"].astype(jnp.float32)                                # (1, D)

    # Additive causal mask (0 / -1e30), DMA'd once and VMEM-resident.
    row = jnp.arange(T)[:, None]
    col = jnp.arange(T)[None, :]
    mask = jnp.where(col > row, -1e30, 0.0).astype(jnp.float32)[None]    # (1, T, T)

    b_blk = _pick_b_blk(B, T)
    grid = (B // b_blk,)
    qkv_w = wqkv.shape[1]

    kernel = functools.partial(_fused_mha_kernel, n_heads=H, head_dim=head_dim,
                               value_dim=value_dim, b_blk=b_blk, seq=T)
    const2 = lambda b: (0, 0)                              # weights stay resident
    const3 = lambda b: (0, 0, 0)

    out = pl.pallas_call(
        kernel,
        out_shape=jax.ShapeDtypeStruct((B, T, D), x.dtype),
        grid_spec=pltpu.PrefetchScalarGridSpec(
            num_scalar_prefetch=0,
            grid=grid,
            in_specs=[
                pl.BlockSpec((b_blk, T, D), lambda b: (b, 0, 0)),        # x
                pl.BlockSpec((D, qkv_w), const2),                        # fused [wq|wk|wv]
                pl.BlockSpec((1, qkv_w), const2),                        # fused bias
                pl.BlockSpec((H * value_dim, D), const2),                # wo
                pl.BlockSpec((1, D), const2),                            # bo
                pl.BlockSpec((1, T, T), const3),                         # additive causal mask
            ],
            out_specs=pl.BlockSpec((b_blk, T, D), lambda b: (b, 0, 0)),
            scratch_shapes=[pltpu.VMEM((b_blk * T, H * value_dim), MATMUL_DTYPE)],
        ),
        compiler_params=pltpu.CompilerParams(
            dimension_semantics=("parallel",),             # batch-block axis shards across TCs
            vmem_limit_bytes=32 * 1024 * 1024),
    )(x.astype(MATMUL_DTYPE), wqkv, bqkv, wo, bo, mask)

    return out


# ----------------------------- reference (plain JAX) -------------------------
def multi_attention_ref(x, params):
    B, T, D = x.shape
    H = N_HEADS
    head_dim = D // H
    value_dim = VALUE_DIM if VALUE_DIM else head_dim
    outs = []
    for h in range(H):
        q = x @ params["wq"][h] + params["bq"][h, 0]
        k = x @ params["wk"][h] + params["bk"][h, 0]
        v = x @ params["wv"][h] + params["bv"][h, 0]
        s = jnp.einsum("bsh,bth->bst", q, k) * math.pow(head_dim, -0.5)
        mask = jnp.triu(jnp.ones((T, T), dtype=bool), k=1)
        s = jnp.where(mask, -jnp.inf, s)
        a = jax.nn.softmax(s, axis=-1)
        outs.append(jnp.einsum("bst,btv->bsv", a, v))
    y = jnp.concatenate(outs, axis=-1)
    return y @ params["wo"] + params["bo"][0]


# ----------------------------- main ------------------------------------------
def init_params(key, model_dim):
    H = N_HEADS
    head_dim = model_dim // H
    value_dim = VALUE_DIM if VALUE_DIM else head_dim
    ks = jax.random.split(key, 8)
    bound = 1.0 / math.sqrt(model_dim)
    bound_o = 1.0 / math.sqrt(H * value_dim)
    u = lambda k, shape, b: jax.random.uniform(k, shape, jnp.float32, -b, b)
    return {
        "wq": u(ks[0], (H, model_dim, head_dim), bound),
        "bq": u(ks[1], (H, 1, head_dim), bound),
        "wk": u(ks[2], (H, model_dim, head_dim), bound),
        "bk": u(ks[3], (H, 1, head_dim), bound),
        "wv": u(ks[4], (H, model_dim, value_dim), bound),
        "bv": u(ks[5], (H, 1, value_dim), bound),
        "wo": u(ks[6], (H * value_dim, model_dim), bound_o),
        "bo": u(ks[7], (1, model_dim), bound_o),
    }


if __name__ == "__main__":
    B, T, D = 2, 8, 32   # batch, seq, model_dim (T <= CONTEXT_SIZE)
    key = jax.random.PRNGKey(0)
    kx, kp = jax.random.split(key)
    x = jax.random.normal(kx, (B, T, D), jnp.float32)
    params = init_params(kp, D)

    out = multi_attention(x, params)
    out = jax.block_until_ready(out)

    ref = multi_attention_ref(x, params)
    assert out.shape == (B, T, D)
    # 2e-3 tolerance: approx (EUP) reciprocal in the softmax denominator
    # (per perf review; set MATMUL_DTYPE=bf16 on v6e/v7x -> use ~2e-2).
    assert jnp.allclose(out, ref, atol=2e-3, rtol=2e-3), "mismatch vs JAX reference"

    print("KERNEL_OK")
</pallas_src>

<mosaic_0001>
module attributes {stable_mosaic.version = 11 : i64} {
  func.func @_fused_mha_kernel(%arg0: i32, %arg1: memref<2x8x32xf32, #tpu.memory_space<vmem>>, %arg2: memref<32x96xf32, #tpu.memory_space<vmem>>, %arg3: memref<1x96xf32, #tpu.memory_space<vmem>>, %arg4: memref<32x32xf32, #tpu.memory_space<vmem>>, %arg5: memref<1x32xf32, #tpu.memory_space<vmem>>, %arg6: memref<1x8x8xf32, #tpu.memory_space<vmem>>, %arg7: memref<2x8x32xf32, #tpu.memory_space<vmem>>, %arg8: memref<16x32xf32, #tpu.memory_space<vmem>>) attributes {dimension_semantics = [#tpu.dimension_semantics<parallel>], iteration_bounds = array<i64: 1>, scalar_prefetch = 0 : i64, scratch_operands = 1 : i64, tpu.core_type = #tpu.core_type<tc>, window_params = [{transform_indices = @transform_0, window_bounds = array<i64: 2, 8, 32>}, {pipeline_mode = #tpu.pipeline_mode<synchronous>, transform_indices = @transform_1, window_bounds = array<i64: 32, 96>}, {pipeline_mode = #tpu.pipeline_mode<synchronous>, transform_indices = @transform_2, window_bounds = array<i64: 1, 96>}, {pipeline_mode = #tpu.pipeline_mode<synchronous>, transform_indices = @transform_3, window_bounds = array<i64: 32, 32>}, {pipeline_mode = #tpu.pipeline_mode<synchronous>, transform_indices = @transform_4, window_bounds = array<i64: 1, 32>}, {pipeline_mode = #tpu.pipeline_mode<synchronous>, transform_indices = @transform_5, window_bounds = array<i64: 1, 8, 8>}, {transform_indices = @transform_6, window_bounds = array<i64: 2, 8, 32>}]} {
    %c0 = arith.constant 0 : index
    %c0_0 = arith.constant 0 : index
    %c0_1 = arith.constant 0 : index
    %0 = vector.load %arg1[%c0, %c0_0, %c0_1] : memref<2x8x32xf32, #tpu.memory_space<vmem>>, vector<2x8x32xf32>
    %1 = vector.shape_cast %0 : vector<2x8x32xf32> to vector<16x32xf32>
    %c0_2 = arith.constant 0 : index
    %c0_3 = arith.constant 0 : index
    %2 = vector.load %arg2[%c0_2, %c0_3] : memref<32x96xf32, #tpu.memory_space<vmem>>, vector<32x96xf32>
    %cst = arith.constant dense<0.000000e+00> : vector<16x96xf32>
    %3 = tpu.matmul %1, %2, %cst {dimension_numbers = #tpu.dot_dimension_numbers<[1], [0], [0], [1], [0, 0, 1, 1], [], []>} : vector<16x32xf32>, vector<32x96xf32>, vector<16x96xf32> -> vector<16x96xf32>
    %c0_4 = arith.constant 0 : index
    %c0_5 = arith.constant 0 : index
    %4 = vector.load %arg3[%c0_4, %c0_5] : memref<1x96xf32, #tpu.memory_space<vmem>>, vector<1x96xf32>
    %5 = vector.broadcast %4 : vector<1x96xf32> to vector<16x96xf32>
    %6 = arith.addf %3, %5 : vector<16x96xf32>
    %7 = vector.shape_cast %6 : vector<16x96xf32> to vector<2x8x96xf32>
    %c0_6 = arith.constant 0 : index
    %c0_7 = arith.constant 0 : index
    %c0_8 = arith.constant 0 : index
    %8 = vector.load %arg6[%c0_6, %c0_7, %c0_8] : memref<1x8x8xf32, #tpu.memory_space<vmem>>, vector<1x8x8xf32>
    %9 = vector.extract_strided_slice %7 {offsets = [0, 0, 0], sizes = [2, 8, 8], strides = [1, 1, 1]} : vector<2x8x96xf32> to vector<2x8x8xf32>
    %10 = vector.extract_strided_slice %7 {offsets = [0, 0, 32], sizes = [2, 8, 8], strides = [1, 1, 1]} : vector<2x8x96xf32> to vector<2x8x8xf32>
    %11 = vector.extract_strided_slice %7 {offsets = [0, 0, 64], sizes = [2, 8, 8], strides = [1, 1, 1]} : vector<2x8x96xf32> to vector<2x8x8xf32>
    "tpu.trace_start"() <{level = 10 : i32, message = "bqd,bkd->bqk"}> : () -> ()
    %cst_9 = arith.constant dense<0.000000e+00> : vector<2x8x8xf32>
    %12 = tpu.matmul %9, %10, %cst_9 {dimension_numbers = #tpu.dot_dimension_numbers<[2], [2], [1], [1], [0, 0, 0, 1, 1, 1], [0], [0]>} : vector<2x8x8xf32>, vector<2x8x8xf32>, vector<2x8x8xf32> -> vector<2x8x8xf32>
    "tpu.trace_stop"() : () -> ()
    %13 = vector.broadcast %8 : vector<1x8x8xf32> to vector<2x8x8xf32>
    %14 = arith.addf %12, %13 : vector<2x8x8xf32>
    %cst_10 = arith.constant dense<0xFF800000> : vector<2x8xf32>
    %15 = vector.multi_reduction <maximumf>, %14, %cst_10 [2] : vector<2x8x8xf32> to vector<2x8xf32>
    %16 = vector.shape_cast %15 : vector<2x8xf32> to vector<2x8x1xf32>
    %17 = vector.broadcast %16 : vector<2x8x1xf32> to vector<2x8x8xf32>
    %18 = arith.subf %14, %17 : vector<2x8x8xf32>
    %19 = math.exp %18 : vector<2x8x8xf32>
    %cst_11 = arith.constant dense<0.000000e+00> : vector<2x8xf32>
    %20 = vector.multi_reduction <add>, %19, %cst_11 [2] : vector<2x8x8xf32> to vector<2x8xf32>
    %21 = vector.shape_cast %20 : vector<2x8xf32> to vector<2x8x1xf32>
    %22 = tpu.reciprocal %21 {approx = true} : vector<2x8x1xf32> -> vector<2x8x1xf32>
    %23 = vector.broadcast %22 : vector<2x8x1xf32> to vector<2x8x8xf32>
    %24 = arith.mulf %19, %23 : vector<2x8x8xf32>
    "tpu.trace_start"() <{level = 10 : i32, message = "bqk,bkv->bqv"}> : () -> ()
    %cst_12 = arith.constant dense<0.000000e+00> : vector<2x8x8xf32>
    %25 = tpu.matmul %24, %11, %cst_12 {dimension_numbers = #tpu.dot_dimension_numbers<[2], [1], [1], [2], [0, 0, 0, 1, 1, 2], [0], [0]>} : vector<2x8x8xf32>, vector<2x8x8xf32>, vector<2x8x8xf32> -> vector<2x8x8xf32>
    "tpu.trace_stop"() : () -> ()
    %26 = vector.shape_cast %25 : vector<2x8x8xf32> to vector<16x8xf32>
    %c0_13 = arith.constant 0 : index
    %c0_14 = arith.constant 0 : index
    %27 = vector.load %arg8[%c0_13, %c0_14] : memref<16x32xf32, #tpu.memory_space<vmem>>, vector<16x8xf32>
    tpu.vector_store %arg8[%c0_13, %c0_14], %26 {strides = array<i32>} : memref<16x32xf32, #tpu.memory_space<vmem>>, vector<16x8xf32>,
    %28 = vector.extract_strided_slice %7 {offsets = [0, 0, 8], sizes = [2, 8, 8], strides = [1, 1, 1]} : vector<2x8x96xf32> to vector<2x8x8xf32>
    %29 = vector.extract_strided_slice %7 {offsets = [0, 0, 40], sizes = [2, 8, 8], strides = [1, 1, 1]} : vector<2x8x96xf32> to vector<2x8x8xf32>
    %30 = vector.extract_strided_slice %7 {offsets = [0, 0, 72], sizes = [2, 8, 8], strides = [1, 1, 1]} : vector<2x8x96xf32> to vector<2x8x8xf32>
    "tpu.trace_start"() <{level = 10 : i32, message = "bqd,bkd->bqk"}> : () -> ()
    %cst_15 = arith.constant dense<0.000000e+00> : vector<2x8x8xf32>
    %31 = tpu.matmul %28, %29, %cst_15 {dimension_numbers = #tpu.dot_dimension_numbers<[2], [2], [1], [1], [0, 0, 0, 1, 1, 1], [0], [0]>} : vector<2x8x8xf32>, vector<2x8x8xf32>, vector<2x8x8xf32> -> vector<2x8x8xf32>
    "tpu.trace_stop"() : () -> ()
    %32 = vector.broadcast %8 : vector<1x8x8xf32> to vector<2x8x8xf32>
    %33 = arith.addf %31, %32 : vector<2x8x8xf32>
    %cst_16 = arith.constant dense<0xFF800000> : vector<2x8xf32>
    %34 = vector.multi_reduction <maximumf>, %33, %cst_16 [2] : vector<2x8x8xf32> to vector<2x8xf32>
    %35 = vector.shape_cast %34 : vector<2x8xf32> to vector<2x8x1xf32>
    %36 = vector.broadcast %35 : vector<2x8x1xf32> to vector<2x8x8xf32>
    %37 = arith.subf %33, %36 : vector<2x8x8xf32>
    %38 = math.exp %37 : vector<2x8x8xf32>
    %cst_17 = arith.constant dense<0.000000e+00> : vector<2x8xf32>
    %39 = vector.multi_reduction <add>, %38, %cst_17 [2] : vector<2x8x8xf32> to vector<2x8xf32>
    %40 = vector.shape_cast %39 : vector<2x8xf32> to vector<2x8x1xf32>
    %41 = tpu.reciprocal %40 {approx = true} : vector<2x8x1xf32> -> vector<2x8x1xf32>
    %42 = vector.broadcast %41 : vector<2x8x1xf32> to vector<2x8x8xf32>
    %43 = arith.mulf %38, %42 : vector<2x8x8xf32>
    "tpu.trace_start"() <{level = 10 : i32, message = "bqk,bkv->bqv"}> : () -> ()
    %cst_18 = arith.constant dense<0.000000e+00> : vector<2x8x8xf32>
    %44 = tpu.matmul %43, %30, %cst_18 {dimension_numbers = #tpu.dot_dimension_numbers<[2], [1], [1], [2], [0, 0, 0, 1, 1, 2], [0], [0]>} : vector<2x8x8xf32>, vector<2x8x8xf32>, vector<2x8x8xf32> -> vector<2x8x8xf32>
    "tpu.trace_stop"() : () -> ()
    %45 = vector.shape_cast %44 : vector<2x8x8xf32> to vector<16x8xf32>
    %c0_19 = arith.constant 0 : index
    %c8 = arith.constant 8 : index
    %46 = vector.load %arg8[%c0_19, %c8] : memref<16x32xf32, #tpu.memory_space<vmem>>, vector<16x8xf32>
    tpu.vector_store %arg8[%c0_19, %c8], %45 {strides = array<i32>} : memref<16x32xf32, #tpu.memory_space<vmem>>, vector<16x8xf32>,
    %47 = vector.extract_strided_slice %7 {offsets = [0, 0, 16], sizes = [2, 8, 8], strides = [1, 1, 1]} : vector<2x8x96xf32> to vector<2x8x8xf32>
    %48 = vector.extract_strided_slice %7 {offsets = [0, 0, 48], sizes = [2, 8, 8], strides = [1, 1, 1]} : vector<2x8x96xf32> to vector<2x8x8xf32>
    %49 = vector.extract_strided_slice %7 {offsets = [0, 0, 80], sizes = [2, 8, 8], strides = [1, 1, 1]} : vector<2x8x96xf32> to vector<2x8x8xf32>
    "tpu.trace_start"() <{level = 10 : i32, message = "bqd,bkd->bqk"}> : () -> ()
    %cst_20 = arith.constant dense<0.000000e+00> : vector<2x8x8xf32>
    %50 = tpu.matmul %47, %48, %cst_20 {dimension_numbers = #tpu.dot_dimension_numbers<[2], [2], [1], [1], [0, 0, 0, 1, 1, 1], [0], [0]>} : vector<2x8x8xf32>, vector<2x8x8xf32>, vector<2x8x8xf32> -> vector<2x8x8xf32>
    "tpu.trace_stop"() : () -> ()
    %51 = vector.broadcast %8 : vector<1x8x8xf32> to vector<2x8x8xf32>
    %52 = arith.addf %50, %51 : vector<2x8x8xf32>
    %cst_21 = arith.constant dense<0xFF800000> : vector<2x8xf32>
    %53 = vector.multi_reduction <maximumf>, %52, %cst_21 [2] : vector<2x8x8xf32> to vector<2x8xf32>
    %54 = vector.shape_cast %53 : vector<2x8xf32> to vector<2x8x1xf32>
    %55 = vector.broadcast %54 : vector<2x8x1xf32> to vector<2x8x8xf32>
    %56 = arith.subf %52, %55 : vector<2x8x8xf32>
    %57 = math.exp %56 : vector<2x8x8xf32>
    %cst_22 = arith.constant dense<0.000000e+00> : vector<2x8xf32>
    %58 = vector.multi_reduction <add>, %57, %cst_22 [2] : vector<2x8x8xf32> to vector<2x8xf32>
    %59 = vector.shape_cast %58 : vector<2x8xf32> to vector<2x8x1xf32>
    %60 = tpu.reciprocal %59 {approx = true} : vector<2x8x1xf32> -> vector<2x8x1xf32>
    %61 = vector.broadcast %60 : vector<2x8x1xf32> to vector<2x8x8xf32>
    %62 = arith.mulf %57, %61 : vector<2x8x8xf32>
    "tpu.trace_start"() <{level = 10 : i32, message = "bqk,bkv->bqv"}> : () -> ()
    %cst_23 = arith.constant dense<0.000000e+00> : vector<2x8x8xf32>
    %63 = tpu.matmul %62, %49, %cst_23 {dimension_numbers = #tpu.dot_dimension_numbers<[2], [1], [1], [2], [0, 0, 0, 1, 1, 2], [0], [0]>} : vector<2x8x8xf32>, vector<2x8x8xf32>, vector<2x8x8xf32> -> vector<2x8x8xf32>
    "tpu.trace_stop"() : () -> ()
    %64 = vector.shape_cast %63 : vector<2x8x8xf32> to vector<16x8xf32>
    %c0_24 = arith.constant 0 : index
    %c16 = arith.constant 16 : index
    %65 = vector.load %arg8[%c0_24, %c16] : memref<16x32xf32, #tpu.memory_space<vmem>>, vector<16x8xf32>
    tpu.vector_store %arg8[%c0_24, %c16], %64 {strides = array<i32>} : memref<16x32xf32, #tpu.memory_space<vmem>>, vector<16x8xf32>,
    %66 = vector.extract_strided_slice %7 {offsets = [0, 0, 24], sizes = [2, 8, 8], strides = [1, 1, 1]} : vector<2x8x96xf32> to vector<2x8x8xf32>
    %67 = vector.extract_strided_slice %7 {offsets = [0, 0, 56], sizes = [2, 8, 8], strides = [1, 1, 1]} : vector<2x8x96xf32> to vector<2x8x8xf32>
    %68 = vector.extract_strided_slice %7 {offsets = [0, 0, 88], sizes = [2, 8, 8], strides = [1, 1, 1]} : vector<2x8x96xf32> to vector<2x8x8xf32>
    "tpu.trace_start"() <{level = 10 : i32, message = "bqd,bkd->bqk"}> : () -> ()
    %cst_25 = arith.constant dense<0.000000e+00> : vector<2x8x8xf32>
    %69 = tpu.matmul %66, %67, %cst_25 {dimension_numbers = #tpu.dot_dimension_numbers<[2], [2], [1], [1], [0, 0, 0, 1, 1, 1], [0], [0]>} : vector<2x8x8xf32>, vector<2x8x8xf32>, vector<2x8x8xf32> -> vector<2x8x8xf32>
    "tpu.trace_stop"() : () -> ()
    %70 = vector.broadcast %8 : vector<1x8x8xf32> to vector<2x8x8xf32>
    %71 = arith.addf %69, %70 : vector<2x8x8xf32>
    %cst_26 = arith.constant dense<0xFF800000> : vector<2x8xf32>
    %72 = vector.multi_reduction <maximumf>, %71, %cst_26 [2] : vector<2x8x8xf32> to vector<2x8xf32>
    %73 = vector.shape_cast %72 : vector<2x8xf32> to vector<2x8x1xf32>
    %74 = vector.broadcast %73 : vector<2x8x1xf32> to vector<2x8x8xf32>
    %75 = arith.subf %71, %74 : vector<2x8x8xf32>
    %76 = math.exp %75 : vector<2x8x8xf32>
    %cst_27 = arith.constant dense<0.000000e+00> : vector<2x8xf32>
    %77 = vector.multi_reduction <add>, %76, %cst_27 [2] : vector<2x8x8xf32> to vector<2x8xf32>
    %78 = vector.shape_cast %77 : vector<2x8xf32> to vector<2x8x1xf32>
    %79 = tpu.reciprocal %78 {approx = true} : vector<2x8x1xf32> -> vector<2x8x1xf32>
    %80 = vector.broadcast %79 : vector<2x8x1xf32> to vector<2x8x8xf32>
    %81 = arith.mulf %76, %80 : vector<2x8x8xf32>
    "tpu.trace_start"() <{level = 10 : i32, message = "bqk,bkv->bqv"}> : () -> ()
    %cst_28 = arith.constant dense<0.000000e+00> : vector<2x8x8xf32>
    %82 = tpu.matmul %81, %68, %cst_28 {dimension_numbers = #tpu.dot_dimension_numbers<[2], [1], [1], [2], [0, 0, 0, 1, 1, 2], [0], [0]>} : vector<2x8x8xf32>, vector<2x8x8xf32>, vector<2x8x8xf32> -> vector<2x8x8xf32>
    "tpu.trace_stop"() : () -> ()
    %83 = vector.shape_cast %82 : vector<2x8x8xf32> to vector<16x8xf32>
    %c0_29 = arith.constant 0 : index
    %c24 = arith.constant 24 : index
    %84 = vector.load %arg8[%c0_29, %c24] : memref<16x32xf32, #tpu.memory_space<vmem>>, vector<16x8xf32>
    tpu.vector_store %arg8[%c0_29, %c24], %83 {strides = array<i32>} : memref<16x32xf32, #tpu.memory_space<vmem>>, vector<16x8xf32>,
    %c0_30 = arith.constant 0 : index
    %c0_31 = arith.constant 0 : index
    %85 = vector.load %arg8[%c0_30, %c0_31] : memref<16x32xf32, #tpu.memory_space<vmem>>, vector<16x32xf32>
    %c0_32 = arith.constant 0 : index
    %c0_33 = arith.constant 0 : index
    %86 = vector.load %arg4[%c0_32, %c0_33] : memref<32x32xf32, #tpu.memory_space<vmem>>, vector<32x32xf32>
    %cst_34 = arith.constant dense<0.000000e+00> : vector<16x32xf32>
    %87 = tpu.matmul %85, %86, %cst_34 {dimension_numbers = #tpu.dot_dimension_numbers<[1], [0], [0], [1], [0, 0, 1, 1], [], []>} : vector<16x32xf32>, vector<32x32xf32>, vector<16x32xf32> -> vector<16x32xf32>
    %c0_35 = arith.constant 0 : index
    %c0_36 = arith.constant 0 : index
    %88 = vector.load %arg5[%c0_35, %c0_36] : memref<1x32xf32, #tpu.memory_space<vmem>>, vector<1x32xf32>
    %89 = vector.broadcast %88 : vector<1x32xf32> to vector<16x32xf32>
    %90 = arith.addf %87, %89 : vector<16x32xf32>
    %91 = vector.shape_cast %90 : vector<16x32xf32> to vector<2x8x32xf32>
    %c0_37 = arith.constant 0 : index
    %c0_38 = arith.constant 0 : index
    %c0_39 = arith.constant 0 : index
    %92 = vector.load %arg7[%c0_37, %c0_38, %c0_39] : memref<2x8x32xf32, #tpu.memory_space<vmem>>, vector<2x8x32xf32>
    tpu.vector_store %arg7[%c0_37, %c0_38, %c0_39], %91 {strides = array<i32>} : memref<2x8x32xf32, #tpu.memory_space<vmem>>, vector<2x8x32xf32>,
    return
  }
  func.func @transform_0(%arg0: i32) -> (i32, i32, i32) {
    %c0_i32 = arith.constant 0 : i32
    %c0_i32_0 = arith.constant 0 : i32
    %c0_i32_1 = arith.constant 0 : i32
    return %arg0, %c0_i32, %c0_i32_0 : i32, i32, i32
  }
  func.func @transform_1(%arg0: i32) -> (i32, i32) {
    %c0_i32 = arith.constant 0 : i32
    %c0_i32_0 = arith.constant 0 : i32
    %c0_i32_1 = arith.constant 0 : i32
    return %c0_i32, %c0_i32_0 : i32, i32
  }
  func.func @transform_2(%arg0: i32) -> (i32, i32) {
    %c0_i32 = arith.constant 0 : i32
    %c0_i32_0 = arith.constant 0 : i32
    %c0_i32_1 = arith.constant 0 : i32
    return %c0_i32, %c0_i32_0 : i32, i32
  }
  func.func @transform_3(%arg0: i32) -> (i32, i32) {
    %c0_i32 = arith.constant 0 : i32
    %c0_i32_0 = arith.constant 0 : i32
    %c0_i32_1 = arith.constant 0 : i32
    return %c0_i32, %c0_i32_0 : i32, i32
  }
  func.func @transform_4(%arg0: i32) -> (i32, i32) {
    %c0_i32 = arith.constant 0 : i32
    %c0_i32_0 = arith.constant 0 : i32
    %c0_i32_1 = arith.constant 0 : i32
    return %c0_i32, %c0_i32_0 : i32, i32
  }
  func.func @transform_5(%arg0: i32) -> (i32, i32, i32) {
    %c0_i32 = arith.constant 0 : i32
    %c0_i32_0 = arith.constant 0 : i32
    %c0_i32_1 = arith.constant 0 : i32
    %c0_i32_2 = arith.constant 0 : i32
    return %c0_i32, %c0_i32_0, %c0_i32_1 : i32, i32, i32
  }
  func.func @transform_6(%arg0: i32) -> (i32, i32, i32) {
    %c0_i32 = arith.constant 0 : i32
    %c0_i32_0 = arith.constant 0 : i32
    %c0_i32_1 = arith.constant 0 : i32
    return %arg0, %c0_i32, %c0_i32_0 : i32, i32, i32
  }
}

</mosaic_0001>

<bundles_post_ra>
// kernel: tpu_custom_call.1
= control target key start
LH: loop header
LB: loop body
LE: loop exit
PB: predicated region body
PF: predicated region fallthrough
CT: control target
= control target key end

     0   :  { %11 = vsyncpa [#allocation4], 0  ;;  %s1154_s0 = inlined_call_operand.hbm [shape: f32[2,8,32], index: 0, kind: input, shape index: {}]   ;;  %s1155_s1 = inlined_call_operand.hbm [shape: f32[32,96], index: 1, kind: input, shape index: {}]   ;;  %s1156_s2 = inlined_call_operand.vmem [shape: f32[1,96], index: 2, kind: input, shape index: {}]   ;;  %s1157_s3 = inlined_call_operand.hbm [shape: f32[32,32], index: 3, kind: input, shape index: {}]   ;;  %s1158_s4 = inlined_call_operand.vmem [shape: f32[1,32], index: 4, kind: input, shape index: {}]   ;;  %s1159_s5 = inlined_call_operand.hbm [shape: f32[1,8,8], index: 5, kind: input, shape index: {}]   ;;  %s1160_s6 = inlined_call_operand.hbm [shape: f32[2,8,32], index: 6, kind: output, shape index: {}]  }
   0x1   :  { %12 = vsyncpa [#allocation7], 0 }
   0x2   :  { %13 = vsyncpa [#allocation10], 0 }
   0x3   :  { %14 = vsyncpa [#allocation5], 0  ;;  %s32_s23 = sshll.u32 %s1155_s1, 4  ;;  %s962_s24 = smov [#allocation6]   ;;  %s33_s23 = int_to_ptr.hbm [resolvable:$true] %s32_s23 }
   0x4   :  { %s34_s25 = sshll.u32 %s962_s24, 4  ;;  %s19_s28 = sshll.u32 %s1154_s0, 4  ;;  %s35_s25 = int_to_ptr.vmem [resolvable:$true] %s34_s25  ;;  %s20_s28 = int_to_ptr.hbm [resolvable:$true] %s19_s28 }
   0x5   :  { %s963_s29 = smov 128   ;;  %s964_s30 = smov 8  }
   0x6   :  { %40 = dma.hbm_to_vmem [thread:$0]  %s33_s23, 512, %s35_s25, [#allocation7], %s963_s29, %s963_s29, %s964_s30  }
   0x7   :  { %s965_s7 = smov [#allocation3]   ;;  %s47_s1 = sshll.u32 %s1157_s3, 4  ;;  %s48_s1 = int_to_ptr.hbm [resolvable:$true] %s47_s1 }
   0x8   :  { %s21_s8 = sshll.u32 %s965_s7, 4  ;;  %s63_s12 = sshll.u32 %s1159_s5, 4  ;;  %s22_s8 = int_to_ptr.vmem [resolvable:$true] %s21_s8  ;;  %s64_s12 = int_to_ptr.hbm [resolvable:$true] %s63_s12 }
   0x9   :  { %27 = dma.hbm_to_vmem [thread:$0]  %s20_s28, 256, %s22_s8, [#allocation4], %s963_s29, %s963_s29, %s964_s30  }
   0xa   :  { %s966_s13 = smov [#allocation8]   ;;  %s967_s15 = smov [#allocation9]  }
   0xb   :  { %s49_s14 = sshll.u32 %s966_s13, 4  ;;  %s65_s3 = sshll.u32 %s967_s15, 4  ;;  %s50_s14 = int_to_ptr.vmem [resolvable:$true] %s49_s14  ;;  %s66_s3 = int_to_ptr.vmem [resolvable:$true] %s65_s3 }
   0xc   :  { %55 = dma.hbm_to_vmem [thread:$0]  %s48_s1, 512, %s50_s14, [#allocation7], %s963_s29, %s963_s29, %s964_s30  }
   0xd   :  { %68 = dma.hbm_to_vmem [thread:$0]  %s64_s12, 128, %s66_s3, [#allocation10]  }
   0xe   :  { %954 = dma.done.wait [#allocation4], 256  }
   0xf   :  { %955 = vsyncadd [#allocation4], 4294967040 }
  0x10   :  { %956 = dma.done.wait [#allocation7], 1024  }
  0x11   :  { %957 = vsyncadd [#allocation7], 4294966272 }
  0x12   :  { %958 = dma.done.wait [#allocation10], 128  }
  0x13   :  { %959 = vsyncadd [#allocation10], 4294967168  ;;  %v90_v0 = vld [vmem:[#allocation6 + $0x18] sm:$0xff]  ;;  %v89_v1 = vld [vmem:[#allocation6 + $0x10] sm:$0xff]  ;;  %vm95_vm0 = vcmask 261120   ;;  %s968_s17 = smov 88  }
  0x14   :  { %114 = vmatpush.msra.mxu0 %v90_v0  ;;  %v88_v2 = vld [vmem:[#allocation6 + $0x8] sm:$0xff]  ;;  %v87_v3 = vld [vmem:[#allocation6] sm:$0xff]  ;;  %v85_v4 = vld [vmem:[#allocation3] sm:$0xff]  ;;  %s969_s18 = smov 96   ;;  %s970_s19 = smov 80   ;;  %vm129_vm1 = vcmask 64512  }
  0x15   :  { %v86_v5 = vld [vmem:[#allocation3 + $0x8] sm:$0xff]  ;;  %v800_v6 = vld [vmem:[%s1156_s2] ss:$0 sm:$0xff]  ;;  %s971_s2 = smov 120   ;;  %s972_s20 = smov 72   ;;  %vm395_vm2 = vcmask 130112  }
  0x16   :  { %115 = vmatpush.msra.mxu0 %v89_v1  ;;  %s973_s21 = smov 112   ;;  %s974_s22 = smov 104   ;;  %v125_v25 = vld [vmem:[#allocation9] sm:$0xff]  ;;  %vm536_vm3 = vcmask 195712   ;;  %vm677_vm4 = vcmask 261312  }
  0x17   :  { %s975_s23 = smov 56   ;;  %s976_s24 = smov 64  }
  0x18   :  { %116 = vmatpush.msra.mxu0 %v88_v2  ;;  %s977_s25 = smov 48   ;;  %s978_s26 = smov 40  }
  0x19   :  { %s979_s27 = smov 16   ;;  %s980_s28 = smov 24  }
  0x1a   :  { %117 = vmatpush.msra.mxu0 %v87_v3  ;;  %s981_s9 = smov [#allocation11]   ;;  %s727_s11 = sshll.u32 %s1160_s6, 4  ;;  %s728_s11 = int_to_ptr.hbm [resolvable:$true] %s727_s11 }
  0x1b   :  { %742 = vmatmul.msk.f32.vlgmr.msra.gmra.mxu0 %vm95_vm0, %v85_v4  ;;  %s725_s10 = sshll.u32 %s981_s9, 4  ;;  %s726_s10 = int_to_ptr.vmem [resolvable:$true] %s725_s10 }
  0x23   :  { %743 = vmatmul.msk.f32.gmra.mxu0 %vm95_vm0, %v86_v5 }
  0x98   :  { %v119_v7 = vpop.f32.mrf.mxu0 }
  0x99   :  { %v1043_v8 = vadd.f32 %v800_v6, %v119_v7 }
  0x9b   :  { %259 = vrot.lane.b32.xlu2 %v1043_v8, %s968_s17  ;;  %127 = vrot.lane.b32.xlu0 %v1043_v8, %s969_s18 }
  0xa0   :  { %v122_v9 = vpop.f32.mrf.mxu0 }
  0xa1   :  { %v1047_v10 = vadd.f32 %v800_v6, %v122_v9 }
  0xa3   :  { %287 = vrot.lane.b32.xlu1 %v1047_v10, %s968_s17  ;;  %400 = vrot.lane.b32.xlu2 %v1043_v8, %s970_s19  ;;  %v795_v41 = vpack.i.bf16 %v1047_v10, %v1043_v8 }
  0xa4   :  { %155 = vrot.lane.b32.xlu0 %v1047_v10, %s969_s18 }
  0xab   :  { %285 = vrot.lane.b32.xlu1 %v1047_v10, %s971_s2  ;;  %541 = vrot.lane.b32.xlu2 %v1043_v8, %s972_s20 }
  0xac   :  { %257 = vrot.lane.b32.xlu0 %v1043_v8, %s971_s2 }
  0xb3   :  { %398 = vrot.lane.b32.xlu1 %v1043_v8, %s973_s21  ;;  %426 = vrot.lane.b32.xlu2 %v1047_v10, %s973_s21 }
  0xb4   :  { %539 = vrot.lane.b32.xlu0 %v1043_v8, %s974_s22 }
  0xbb   :  { %428 = vrot.lane.b32.xlu1 %v1047_v10, %s970_s19 }
  0xbc   :  { %569 = vrot.lane.b32.xlu0 %v1047_v10, %s972_s20 }
  0xc3   :  { %567 = vrot.lane.b32.xlu1 %v1047_v10, %s974_s22 }
  0xf5   :  { %v260_v11 = vpop.permute.xlu2 %259 }
  0xfd   :  { %v401_v13 = vpop.permute.xlu2 %400 }
 0x105   :  { %v542_v17 = vpop.permute.xlu2 %541 }
 0x10d   :  { %v128_v12 = vpop.permute.xlu0 %127  ;;  %v427_v23 = vpop.permute.xlu2 %426 }
 0x10e   :  { %744 = vmatpush.xpose.msk.msra.mxu1 %vm129_vm1, %v128_v12 }
 0x111   :  { %745 = vmatmul.msk.f32.vlgmr.msra.gmra.mxu1 %vm129_vm1, %v1043_v8 }
 0x112   :  { %750 = vmatpush.xpose.msk.msrb.mxu1 %vm129_vm1, %v260_v11 }
 0x115   :  { %v288_v14 = vpop.permute.xlu1 %287 }
 0x116   :  { %v156_v15 = vpop.permute.xlu0 %155  ;;  %752 = vmatpush.xpose.msk.msra.mxu2 %vm129_vm1, %v288_v14 }
 0x117   :  { %746 = vmatpush.xpose.msk.msrb.mxu0 %vm129_vm1, %v156_v15 }
 0x11a   :  { %756 = vmatpush.xpose.msk.msrb.mxu2 %vm129_vm1, %v401_v13  ;;  %747 = vmatmul.msk.f32.vlgmr.msrb.gmra.mxu0 %vm129_vm1, %v1047_v10 }
 0x11d   :  { %v286_v16 = vpop.permute.xlu1 %285 }
 0x11e   :  { %v258_v18 = vpop.permute.xlu0 %257  ;;  %753 = vmatmul.msk.f32.vlgmr.msra.gmra.mxu2 %vm129_vm1, %v286_v16 }
 0x11f   :  { %751 = vmatmul.msk.f32.vlgmr.msrb.gmra.mxu1 %vm129_vm1, %v258_v18  ;;  %762 = vmatpush.xpose.msk.msra.mxu2 %vm129_vm1, %v542_v17 }
 0x125   :  { %v399_v19 = vpop.permute.xlu1 %398 }
 0x126   :  { %v540_v20 = vpop.permute.xlu0 %539  ;;  %757 = vmatmul.msk.f32.vlgmr.msrb.gmra.mxu2 %vm129_vm1, %v399_v19 }
 0x12d   :  { %v429_v21 = vpop.permute.xlu1 %428 }
 0x12e   :  { %v570_v22 = vpop.permute.xlu0 %569  ;;  %758 = vmatpush.xpose.msk.msra.mxu0 %vm129_vm1, %v429_v21  ;;  %763 = vmatmul.msk.f32.vlgmr.msra.gmra.mxu2 %vm129_vm1, %v540_v20 }
 0x131   :  { %759 = vmatmul.msk.f32.vlgmr.msra.gmra.mxu0 %vm129_vm1, %v427_v23 }
 0x132   :  { %764 = vmatpush.xpose.msk.msrb.mxu0 %vm129_vm1, %v570_v22 }
 0x135   :  { %v568_v24 = vpop.permute.xlu1 %567 }
 0x139   :  { %765 = vmatmul.msk.f32.vlgmr.msrb.gmra.mxu0 %vm129_vm1, %v568_v24 }
 0x18e   :  { %v151_v26 = vpop.f32.mrf.mxu1 }
 0x18f   :  { %v152_v27 = vadd.f32 %v151_v26, %v125_v25 }
 0x191   :  { %v181_v28 = vsel %vm129_vm1, %v152_v27, -inf }
 0x192   :  { %182 = vmax.xlane.f32.xlu2 %v181_v28 }
 0x197   :  { %v178_v29 = vpop.f32.mrf.mxu0 }
 0x198   :  { %v179_v30 = vadd.f32 %v178_v29, %v125_v25 }
 0x19a   :  { %v184_v31 = vsel %vm129_vm1, %v179_v30, -inf }
 0x19b   :  { %185 = vmax.xlane.f32.xlu0 %v184_v31 }
 0x19c   :  { %v282_v32 = vpop.f32.mrf.mxu1 }
 0x19d   :  { %v1081_v33 = vadd.f32 %v282_v32, %v125_v25 }
 0x19f   :  { %v313_v34 = vsel %vm129_vm1, %v1081_v33, -inf }
 0x1a0   :  { %314 = vmax.xlane.f32.xlu1 %v313_v34 }
 0x1a1   :  { %v310_v35 = vpop.f32.mrf.mxu2 }
 0x1a2   :  { %v311_v36 = vadd.f32 %v310_v35, %v125_v25 }
 0x1a4   :  { %v316_v37 = vsel %vm129_vm1, %v311_v36, -inf }
 0x1a5   :  { %317 = vmax.xlane.f32.xlu2 %v316_v37 }
 0x1a9   :  { %v423_v38 = vpop.f32.mrf.mxu2 }
 0x1aa   :  { %v424_v39 = vadd.f32 %v423_v38, %v125_v25 }
 0x1ac   :  { %v454_v40 = vsel %vm129_vm1, %v424_v39, -inf }
 0x1ad   :  { %455 = vmax.xlane.f32.xlu2 %v454_v40 }
 0x1ae   :  { %v451_v42 = vpop.f32.mrf.mxu0 }
 0x1af   :  { %v452_v43 = vadd.f32 %v451_v42, %v125_v25  ;;  %796 = vrot.lane.b32.xlu0 %v795_v41, %s975_s23 }
 0x1b1   :  { %v457_v44 = vsel %vm129_vm1, %v452_v43, -inf  ;;  %v564_v45 = vpop.f32.mrf.mxu2 }
 0x1b2   :  { %458 = vmax.xlane.f32.xlu1 %v457_v44  ;;  %v565_v46 = vadd.f32 %v564_v45, %v125_v25 }
 0x1b4   :  { %v595_v47 = vsel %vm129_vm1, %v565_v46, -inf }
 0x1b6   :  { %v592_v48 = vpop.f32.mrf.mxu0 }
 0x1b7   :  { %v1091_v49 = vadd.f32 %v592_v48, %v125_v25 }
 0x1b9   :  { %v598_v50 = vsel %vm129_vm1, %v1091_v49, -inf }
 0x1c5   :  { %791 = vrot.lane.b32.xlu2 %v795_v41, %s976_s24 }
 0x1d9   :  { %596 = vmax.xlane.f32.xlu0 %v595_v47 }
 0x1ee   :  { %599 = vmax.xlane.f32.xlu2 %v598_v50 }
 0x205   :  { %v183_v51 = vpop.xlane.xlu2 %182 }
 0x206   :  { %v187_v52 = vsub.f32 %v152_v27, %v183_v51  ;;  %476 = vrot.lane.b32.xlu2 %v1043_v8, %s977_s25 }
 0x208   :  { %v189_v53 = vmul.f32 1.442695, %v187_v52 }
 0x20a   :  { %802 = vpow2.f32 %v189_v53 }
 0x20e   :  { %v186_v54 = vpop.xlane.xlu0 %185 }
 0x20f   :  { %v188_v55 = vsub.f32 %v179_v30, %v186_v54 }
 0x210   :  { %v1097_v56 = vpop.eup %802 }
 0x211   :  { %v191_v57 = vmul.f32 1.442695, %v188_v55  ;;  %v193_v58 = vsel %vm129_vm1, %v1097_v56, 0.0 }
 0x212   :  { %194 = vadd.xlane.f32.xlu0 %v193_v58 }
 0x213   :  { %804 = vpow2.f32 %v191_v57  ;;  %v315_v0 = vpop.xlane.xlu1 %314 }
 0x218   :  { %v318_v59 = vpop.xlane.xlu2 %317 }
 0x219   :  { %v1101_v60 = vpop.eup %804  ;;  %v320_v61 = vsub.f32 %v311_v36, %v318_v59 }
 0x21a   :  { %v196_v62 = vsel %vm129_vm1, %v1101_v60, 0.0 }
 0x21b   :  { %v323_v63 = vmul.f32 1.442695, %v320_v61  ;;  %197 = vadd.xlane.f32.xlu1 %v196_v62 }
 0x21d   :  { %806 = vpow2.f32 %v323_v63 }
 0x220   :  { %v456_v1 = vpop.xlane.xlu2 %455 }
 0x221   :  { %v797_v2 = vpop.permute.xlu0 %796  ;;  %v460_v9 = vsub.f32 %v424_v39, %v456_v1 }
 0x222   :  { %v799_v3 = vunpack.i.h.bf16 %v797_v2  ;;  %v798_v36 = vunpack.i.l.bf16 %v797_v2 }
 0x223   :  { %v1105_v4 = vpop.eup %806  ;;  %v462_v15 = vmul.f32 1.442695, %v460_v9  ;;  %v682_v9 = vld [vmem:[#allocation8] sm:$0xff] }
 0x224   :  { %382 = vmatpush.msra.mxu1 %v799_v3  ;;  %v328_v5 = vsel %vm129_vm1, %v1105_v4, 0.0 }
 0x225   :  { %v459_v6 = vpop.xlane.xlu1 %458  ;;  %329 = vadd.xlane.f32.xlu1 %v328_v5  ;;  %v685_v5 = vld [vmem:[#allocation8 + $0x18] sm:$0xff] }
 0x226   :  { %v461_v7 = vsub.f32 %v452_v43, %v459_v6  ;;  %617 = vrot.lane.b32.xlu0 %v1043_v8, %s978_s26  ;;  %v319_v8 = vsub.f32 %v1081_v33, %v315_v0  ;;  %v684_v6 = vld [vmem:[#allocation8 + $0x10] sm:$0xff]  ;;  %708 = vmatpush.msrb.mxu2 %v685_v5 }
 0x228   :  { %v464_v11 = vmul.f32 1.442695, %v461_v7  ;;  %v792_v12 = vpop.permute.xlu2 %791  ;;  %v321_v20 = vmul.f32 1.442695, %v319_v8  ;;  %v683_v7 = vld [vmem:[#allocation8 + $0x8] sm:$0xff]  ;;  %709 = vmatpush.msrb.mxu2 %v684_v6 }
 0x229   :  { %v793_v13 = vunpack.i.l.bf16 %v792_v12  ;;  %v794_v14 = vunpack.i.h.bf16 %v792_v12 }
 0x22a   :  { %808 = vpow2.f32 %v464_v11  ;;  %710 = vmatpush.msrb.mxu2 %v683_v7 }
 0x22b   :  { %224 = vmatpush.msra.mxu3 %v793_v13  ;;  %810 = vpow2.f32 %v462_v15 }
 0x22c   :  { %812 = vpow2.f32 %v321_v20  ;;  %711 = vmatpush.msrb.mxu2 %v682_v9 }
 0x22d   :  { %250 = vmatpush.msrb.mxu3 %v794_v14 }
 0x230   :  { %v1111_v16 = vpop.eup %808 }
 0x231   :  { %v469_v17 = vsel %vm129_vm1, %v1111_v16, 0.0  ;;  %v811_v18 = vpop.eup %810 }
 0x232   :  { %470 = vadd.xlane.f32.xlu1 %v469_v17  ;;  %v466_v19 = vsel %vm129_vm1, %v811_v18, 0.0  ;;  %v813_v21 = vpop.eup %812 }
 0x233   :  { %v325_v25 = vsel %vm129_vm1, %v813_v21, 0.0 }
 0x23a   :  { %467 = vadd.xlane.f32.xlu1 %v466_v19  ;;  %v801_v19 = vld [vmem:[%s1158_s4] ss:$0 sm:$0xff] }
 0x24c   :  { %v597_v22 = vpop.xlane.xlu0 %596 }
 0x24d   :  { %v601_v23 = vsub.f32 %v565_v46, %v597_v22 }
 0x24f   :  { %v603_v24 = vmul.f32 1.442695, %v601_v23 }
 0x250   :  { %326 = vadd.xlane.f32.xlu0 %v325_v25 }
 0x251   :  { %814 = vpow2.f32 %v603_v24 }
 0x257   :  { %v815_v26 = vpop.eup %814 }
 0x258   :  { %v607_v27 = vsel %vm129_vm1, %v815_v26, 0.0 }
 0x259   :  { %608 = vadd.xlane.f32.xlu1 %v607_v27 }
 0x261   :  { %v600_v28 = vpop.xlane.xlu2 %599 }
 0x262   :  { %v602_v29 = vsub.f32 %v1091_v49, %v600_v28 }
 0x264   :  { %v605_v30 = vmul.f32 1.442695, %v602_v29  ;;  %643 = vrot.lane.b32.xlu0 %v1047_v10, %s978_s26 }
 0x266   :  { %816 = vpow2.f32 %v605_v30 }
 0x269   :  { %v477_v40 = vpop.permute.xlu2 %476 }
 0x26c   :  { %v817_v31 = vpop.eup %816 }
 0x26d   :  { %v610_v32 = vsel %vm129_vm1, %v817_v31, 0.0 }
 0x26e   :  { %611 = vadd.xlane.f32.xlu2 %v610_v32 }
 0x272   :  { %502 = vrot.lane.b32.xlu1 %v1047_v10, %s977_s25 }
 0x285   :  { %v195_v33 = vpop.xlane.xlu0 %194 }
 0x286   :  { %818 = vrcp.f32 %v195_v33 }
 0x28c   :  { %v819_v34 = vpop.eup %818 }
 0x28d   :  { %v201_v35 = vmul.f32 %v819_v34, %v1097_v56 }
 0x28e   :  { %v198_v37 = vpop.xlane.xlu1 %197 }
 0x28f   :  { %820 = vrcp.f32 %v198_v37  ;;  %748 = vmatmul.msk.f32.vlgmr.msra.gmra.mxu3 %vm129_vm1, %v201_v35 }
 0x290   :  { %356 = vmatpush.msra.mxu3 %v798_v36 }
 0x295   :  { %v821_v38 = vpop.eup %820 }
 0x296   :  { %v202_v39 = vmul.f32 %v821_v38, %v1101_v60 }
 0x298   :  { %749 = vmatmul.msk.f32.vlgmr.msrb.gmra.mxu3 %vm129_vm1, %v202_v39  ;;  %v330_v41 = vpop.xlane.xlu1 %329  ;;  %v618_v43 = vpop.permute.xlu0 %617 }
 0x299   :  { %497 = vmatpush.msrb.mxu3 %v477_v40  ;;  %822 = vrcp.f32 %v330_v41 }
 0x29f   :  { %v823_v10 = vpop.eup %822 }
 0x2a0   :  { %v334_v42 = vmul.f32 %v823_v10, %v1105_v4 }
 0x2a2   :  { %755 = vmatmul.msk.f32.vlgmr.msra.gmra.mxu1 %vm129_vm1, %v334_v42 }
 0x2a5   :  { %v471_v44 = vpop.xlane.xlu1 %470 }
 0x2ad   :  { %v468_v46 = vpop.xlane.xlu1 %467 }
 0x2c3   :  { %v327_v45 = vpop.xlane.xlu0 %326 }
 0x2c4   :  { %824 = vrcp.f32 %v327_v45 }
 0x2c5   :  { %826 = vrcp.f32 %v468_v46 }
 0x2ca   :  { %v825_v47 = vpop.eup %824 }
 0x2cb   :  { %v333_v48 = vmul.f32 %v825_v47, %v813_v21  ;;  %v827_v50 = vpop.eup %826 }
 0x2cc   :  { %v609_v49 = vpop.xlane.xlu1 %608  ;;  %v474_v51 = vmul.f32 %v827_v50, %v811_v18 }
 0x2cd   :  { %754 = vmatmul.msk.f32.vlgmr.msra.gmra.mxu3 %vm129_vm1, %v333_v48  ;;  %828 = vrcp.f32 %v609_v49 }
 0x2ce   :  { %638 = vmatpush.msra.mxu3 %v618_v43  ;;  %830 = vrcp.f32 %v471_v44 }
 0x2d3   :  { %v829_v52 = vpop.eup %828 }
 0x2d4   :  { %v615_v53 = vmul.f32 %v829_v52, %v815_v26  ;;  %v831_v54 = vpop.eup %830 }
 0x2d5   :  { %760 = vmatmul.msk.f32.vlgmr.msrb.gmra.mxu3 %vm129_vm1, %v474_v51  ;;  %v475_v56 = vmul.f32 %v831_v54, %v1111_v16 }
 0x2d6   :  { %v644_v58 = vpop.permute.xlu0 %643 }
 0x2dd   :  { %766 = vmatmul.msk.f32.vlgmr.msra.gmra.mxu3 %vm129_vm1, %v615_v53 }
 0x2e1   :  { %v612_v55 = vpop.xlane.xlu2 %611 }
 0x2e2   :  { %832 = vrcp.f32 %v612_v55 }
 0x2e4   :  { %v503_v57 = vpop.permute.xlu1 %502 }
 0x2e5   :  { %523 = vmatpush.msrb.mxu1 %v503_v57 }
 0x2e6   :  { %761 = vmatmul.msk.f32.vlgmr.msrb.gmra.mxu1 %vm129_vm1, %v475_v56 }
 0x2e7   :  { %664 = vmatpush.msra.mxu1 %v644_v58 }
 0x2e8   :  { %v833_v59 = vpop.eup %832 }
 0x2e9   :  { %v616_v60 = vmul.f32 %v833_v59, %v817_v31 }
 0x2ee   :  { %767 = vmatmul.msk.f32.vlgmr.msra.gmra.mxu1 %vm129_vm1, %v616_v60 }
 0x312   :  { %v226_v61 = vpop.f32.mrf.mxu3 }
 0x313   :  { %255 = vst.msk [vmem:[#allocation2] sm:$0xff] %vm129_vm1, %v226_v61 }
 0x31b   :  { %v252_v62 = vpop.f32.mrf.mxu3 }
 0x31c   :  { %256 = vst.msk [vmem:[#allocation2 + $0x8] sm:$0xff] %vm129_vm1, %v252_v62 }
 0x31f   :  { %v384_v1 = vpop.f32.mrf.mxu1 }
 0x350   :  { %v358_v63 = vpop.f32.mrf.mxu3 }
 0x351   :  { %389 = vrot.lane.b32.xlu0 %v358_v63, %s964_s30 }
 0x358   :  { %v499_v0 = vpop.f32.mrf.mxu3 }
 0x359   :  { %530 = vrot.lane.b32.xlu0 %v499_v0, %s979_s27 }
 0x360   :  { %v640_v2 = vpop.f32.mrf.mxu3 }
 0x361   :  { %391 = vrot.lane.b32.xlu0 %v384_v1, %s964_s30  ;;  %671 = vrot.lane.b32.xlu1 %v640_v2, %s980_s28 }
 0x363   :  { %v525_v3 = vpop.f32.mrf.mxu1 }
 0x369   :  { %532 = vrot.lane.b32.xlu1 %v525_v3, %s979_s27 }
 0x36b   :  { %v666_v4 = vpop.f32.mrf.mxu1 }
 0x36c   :  { %673 = vrot.lane.b32.xlu0 %v666_v4, %s980_s28 }
 0x3c3   :  { %v390_v11 = vpop.permute.xlu0 %389 }
 0x3c4   :  { %396 = vst.msk [vmem:[#allocation2] sm:$0xff] %vm395_vm2, %v390_v11 }
 0x3cb   :  { %v531_v12 = vpop.permute.xlu0 %530 }
 0x3cc   :  { %537 = vst.msk [vmem:[#allocation2] sm:$0xff] %vm536_vm3, %v531_v12 }
 0x3d3   :  { %v392_v13 = vpop.permute.xlu0 %391  ;;  %v672_v14 = vpop.permute.xlu1 %671 }
 0x3d4   :  { %397 = vst.msk [vmem:[#allocation2 + $0x8] sm:$0xff] %vm395_vm2, %v392_v13 }
 0x3d5   :  { %678 = vst.msk [vmem:[#allocation2] sm:$0xff] %vm677_vm4, %v672_v14 }
 0x3db   :  { %v533_v15 = vpop.permute.xlu1 %532 }
 0x3dc   :  { %538 = vst.msk [vmem:[#allocation2 + $0x8] sm:$0xff] %vm536_vm3, %v533_v15  ;;  %v680_v16 = vld [vmem:[#allocation2] sm:$0xff] }
 0x3dd   :  { %768 = vmatmul.msk.f32.vlgmr.msrb.gmra.mxu2 %vm95_vm0, %v680_v16 }
 0x3de   :  { %v674_v17 = vpop.permute.xlu0 %673 }
 0x3df   :  { %679 = vst.msk [vmem:[#allocation2 + $0x8] sm:$0xff] %vm677_vm4, %v674_v17 }
 0x3e6   :  { %v681_v18 = vld [vmem:[#allocation2 + $0x8] sm:$0xff] }
 0x3e7   :  { %769 = vmatmul.msk.f32.gmra.mxu2 %vm95_vm0, %v681_v18 }
 0x460   :  { %v713_v8 = vpop.f32.mrf.mxu2 }
 0x461   :  { %v714_v20 = vadd.f32 %v801_v19, %v713_v8 }
 0x463   :  { %719 = vst.msk [vmem:[#allocation11] sm:$0xff] %vm95_vm0, %v714_v20 }
 0x46a   :  { %v716_v21 = vpop.f32.mrf.mxu2 }
 0x46b   :  { %v717_v22 = vadd.f32 %v801_v19, %v716_v21 }
 0x46d   :  { %720 = vst.msk [vmem:[#allocation11 + $0x8] sm:$0xff] %vm95_vm0, %v717_v22 }
 0x46e   :  { %733 = dma.vmem_to_hbm [thread:$0]  %s726_s10, 256, %s728_s11, [#allocation5], %s963_s29, %s963_s29, %s964_s30  }
 0x46f   :  { %960 = dma.done.wait [#allocation5], 256  }
 0x470   :  { %961 = vsyncadd [#allocation5], 4294967040 }
 0x471   :  { %738 = vsyncpa [#allocation4], 1 }
 0x472   :  { %739 = vsyncpa [#allocation7], 1 }
 0x473   :  { %740 = vsyncpa [#allocation10], 1 }
 0x474   :  { %741 = vsyncpa [#allocation5], 1 }

</bundles_post_ra>
